<compile_context>
chip_gen: v6e
topology: v6e:2x2x1
jax: 0.10.0
libtpu: 0.0.40
codegen_flags: <defaults>
</compile_context>

<pallas_src>
import functools

import jax
import jax.numpy as jnp
from jax.experimental import pallas as pl
from jax.experimental.pallas import tpu as pltpu


def _pick_tile_m(batch, feat, tile_m, itemsize=4, vmem_budget_bytes=8 << 20):
    """Large batch tile, but bounded by a VMEM budget.

    Per-step working set ~= double-buffered (x tile + out tile)
                         = 2 * 2 * tile_m * feat * itemsize bytes.
    """
    cap = max(8, vmem_budget_bytes // (4 * feat * itemsize))
    tile_m = min(tile_m, cap)
    if batch <= tile_m:
        return batch                      # single full-extent block (always legal)
    return max(8, (tile_m // 8) * 8)      # keep (8, 128) sublane alignment


def _train_kernel(train_ref, shift_ref, u_ref, x_ref, o_ref, mdiff_ref, *, alpha):
    # train_ref / shift_ref: (2, D), row 0 = variance, row 1 = mean
    # (torch.var_mean ordering).  u_ref: (1, D) uniform [0, 1) draws made on the
    # host once per forward (same mask for every batch tile, as in the PyTorch
    # module).  The (1, D) math is recomputed each grid step; it is negligible
    # compared to the (tile_m, D) broadcast multiply.
    train_var = train_ref[0:1, :]
    train_mean = train_ref[1:2, :]
    shift_mean = shift_ref[1:2, :]

    mean_dif = jnp.abs(train_mean - shift_mean)
    scaled = mean_dif / train_var

    # MinMaxScaler().fit_transform on the reshape(-1, 1) column == global min/max.
    smin = jnp.min(scaled)
    smax = jnp.max(scaled)
    rng = smax - smin
    scaled01 = jnp.where(rng > 0, (scaled - smin) / rng, jnp.zeros_like(scaled))

    mask = ((u_ref[...] + jnp.float32(alpha)) > scaled01).astype(x_ref.dtype)  # (1, D)
    o_ref[...] = x_ref[...] * mask                                             # broadcast over rows
    mdiff_ref[...] = scaled01.astype(mdiff_ref.dtype)


def shifted_dist_dropout_train(x, training_distribution, shifted_distribution, key,
                               *, alpha=1.0, tile_m=256):
    """Training-mode forward.

    x: (B, D); training_distribution / shifted_distribution: (2, D) = [var, mean];
    key: jax PRNG key.  Returns (y, recent_mean_diff (1, D), uniforms (1, D)).
    """
    B, D = x.shape
    train = training_distribution.astype(jnp.float32)
    shift = shifted_distribution.astype(jnp.float32)

    # torch.rand(*mean_dif.shape): one uniform draw per feature, per forward.
    u = jax.random.uniform(key, (1, D), jnp.float32)

    tm = _pick_tile_m(B, D, tile_m, x.dtype.itemsize)
    grid = (pl.cdiv(B, tm),)

    kernel = functools.partial(_train_kernel, alpha=float(alpha))

    y, mdiff = pl.pallas_call(
        kernel,
        out_shape=(
            jax.ShapeDtypeStruct((B, D), x.dtype),
            jax.ShapeDtypeStruct((1, D), jnp.float32),
        ),
        grid_spec=pltpu.PrefetchScalarGridSpec(
            num_scalar_prefetch=0,
            grid=grid,
            in_specs=[
                pl.BlockSpec((2, D), lambda i: (0, 0)),    # training stats, resident
                pl.BlockSpec((2, D), lambda i: (0, 0)),    # shifted stats, resident
                pl.BlockSpec((1, D), lambda i: (0, 0)),    # uniform draws, resident
                pl.BlockSpec((tm, D), lambda i: (i, 0)),   # x batch tile
            ],
            out_specs=(
                pl.BlockSpec((tm, D), lambda i: (i, 0)),   # y batch tile
                pl.BlockSpec((1, D), lambda i: (0, 0)),    # recent_mean_diff
            ),
        ),
        compiler_params=pltpu.CompilerParams(
            # The (1, D) output revisits the same block every step, so keep the
            # batch axis sequential; the op is HBM-bandwidth bound anyway.
            dimension_semantics=("arbitrary",),
            vmem_limit_bytes=32 * 1024 * 1024,
        ),
    )(train, shift, u, x)
    return y, mdiff, u


def _eval_kernel(mdiff_ref, x_ref, o_ref):
    scale = (jnp.float32(1.0) - mdiff_ref[...]).astype(x_ref.dtype)    # (1, D)
    o_ref[...] = x_ref[...] * scale


def shifted_dist_dropout_eval(x, recent_mean_diff, *, tile_m=256):
    """Eval-mode forward: x * (1 - recent_mean_diff)."""
    B, D = x.shape
    rmd = recent_mean_diff.reshape(1, D).astype(jnp.float32)
    tm = _pick_tile_m(B, D, tile_m, x.dtype.itemsize)
    grid = (pl.cdiv(B, tm),)

    return pl.pallas_call(
        _eval_kernel,
        out_shape=jax.ShapeDtypeStruct((B, D), x.dtype),
        grid_spec=pltpu.PrefetchScalarGridSpec(
            num_scalar_prefetch=0,
            grid=grid,
            in_specs=[
                pl.BlockSpec((1, D), lambda i: (0, 0)),      # scale vector, resident
                pl.BlockSpec((tm, D), lambda i: (i, 0)),     # x batch tile
            ],
            out_specs=pl.BlockSpec((tm, D), lambda i: (i, 0)),
        ),
        compiler_params=pltpu.CompilerParams(
            dimension_semantics=("parallel",),
            vmem_limit_bytes=32 * 1024 * 1024,
        ),
    )(rmd, x)


if __name__ == "__main__":
    # Small shapes consistent with the module: batch=16, input_dim=256
    # (feature axis is a multiple of 128 -> lane-dense stores).
    batch, input_dim = 16, 256

    key = jax.random.PRNGKey(0)
    kx, kv1, km1, km2, kv2, ku = jax.random.split(key, 6)

    x = jax.random.normal(kx, (batch, input_dim), jnp.float32)

    # Distributions: rows are [variance, mean] (torch.var_mean ordering).
    train_var = jax.random.uniform(kv1, (input_dim,), jnp.float32, 0.5, 1.5)
    train_mean = jax.random.normal(km1, (input_dim,), jnp.float32)
    shift_var = jax.random.uniform(kv2, (input_dim,), jnp.float32, 0.5, 1.5)
    shift_mean = jax.random.normal(km2, (input_dim,), jnp.float32)
    training_distribution = jnp.stack([train_var, train_mean])    # (2, D)
    shifted_distribution = jnp.stack([shift_var, shift_mean])     # (2, D)

    # ---- training path ----
    out, mdiff, u = shifted_dist_dropout_train(
        x, training_distribution, shifted_distribution, ku, alpha=1.0)
    out = jax.block_until_ready(out)

    # Reference for the scaled mean-difference (MinMaxScaler over features).
    md = jnp.abs(train_mean - shift_mean) / train_var
    md01 = (md - md.min()) / (md.max() - md.min())
    assert jnp.allclose(mdiff[0], md01, atol=1e-5, rtol=1e-5)

    # Uniform draws must be in [0, 1).
    assert bool(jnp.all((u >= 0.0) & (u < 1.0)))

    # Output must equal x * mask, with the mask rebuilt from the same uniforms
    # and the kernel's own scaled mean-diff (bit-exact reference; torch's RNG
    # itself cannot be reproduced, but the semantics match).
    mask_ref = ((u[0] + 1.0) > mdiff[0]).astype(x.dtype)
    ref_train = x * mask_ref[None, :]
    assert out.shape == (batch, input_dim)
    assert jnp.allclose(out, ref_train, atol=1e-6, rtol=1e-6)

    # ---- eval path ----
    out_eval = shifted_dist_dropout_eval(x, mdiff)
    out_eval = jax.block_until_ready(out_eval)
    ref_eval = x * (1.0 - md01)[None, :]
    assert jnp.allclose(out_eval, ref_eval, atol=1e-5, rtol=1e-5)

    print("KERNEL_OK")
</pallas_src>

<mosaic_0001>
module attributes {stable_mosaic.version = 11 : i64} {
  func.func @_train_kernel(%arg0: i32, %arg1: memref<2x256xf32, #tpu.memory_space<vmem>>, %arg2: memref<2x256xf32, #tpu.memory_space<vmem>>, %arg3: memref<1x256xf32, #tpu.memory_space<vmem>>, %arg4: memref<16x256xf32, #tpu.memory_space<vmem>>, %arg5: memref<16x256xf32, #tpu.memory_space<vmem>>, %arg6: memref<1x256xf32, #tpu.memory_space<vmem>>) attributes {dimension_semantics = [#tpu.dimension_semantics<arbitrary>], iteration_bounds = array<i64: 1>, scalar_prefetch = 0 : i64, scratch_operands = 0 : i64, tpu.core_type = #tpu.core_type<tc>, window_params = [{pipeline_mode = #tpu.pipeline_mode<synchronous>, transform_indices = @transform_0, window_bounds = array<i64: 2, 256>}, {pipeline_mode = #tpu.pipeline_mode<synchronous>, transform_indices = @transform_1, window_bounds = array<i64: 2, 256>}, {pipeline_mode = #tpu.pipeline_mode<synchronous>, transform_indices = @transform_2, window_bounds = array<i64: 1, 256>}, {transform_indices = @transform_3, window_bounds = array<i64: 16, 256>}, {transform_indices = @transform_4, window_bounds = array<i64: 16, 256>}, {pipeline_mode = #tpu.pipeline_mode<synchronous>, transform_indices = @transform_5, window_bounds = array<i64: 1, 256>}]} {
    %c0 = arith.constant 0 : index
    %c0_0 = arith.constant 0 : index
    %0 = vector.load %arg1[%c0, %c0_0] : memref<2x256xf32, #tpu.memory_space<vmem>>, vector<1x256xf32>
    %c1 = arith.constant 1 : index
    %c0_1 = arith.constant 0 : index
    %1 = vector.load %arg1[%c1, %c0_1] : memref<2x256xf32, #tpu.memory_space<vmem>>, vector<1x256xf32>
    %c1_2 = arith.constant 1 : index
    %c0_3 = arith.constant 0 : index
    %2 = vector.load %arg2[%c1_2, %c0_3] : memref<2x256xf32, #tpu.memory_space<vmem>>, vector<1x256xf32>
    %3 = arith.subf %1, %2 : vector<1x256xf32>
    %4 = math.absf %3 : vector<1x256xf32>
    %5 = arith.divf %4, %0 : vector<1x256xf32>
    %6 = vector.shape_cast %5 : vector<1x256xf32> to vector<1x1x256xf32>
    %cst = arith.constant dense<0x7F800000> : vector<1xf32>
    %7 = vector.multi_reduction <minimumf>, %6, %cst [1, 2] : vector<1x1x256xf32> to vector<1xf32>
    %8 = vector.shape_cast %7 : vector<1xf32> to vector<1x1x1xf32>
    %9 = vector.extract %8[0, 0, 0] : f32 from vector<1x1x1xf32>
    %10 = vector.shape_cast %5 : vector<1x256xf32> to vector<1x1x256xf32>
    %cst_4 = arith.constant dense<0xFF800000> : vector<1xf32>
    %11 = vector.multi_reduction <maximumf>, %10, %cst_4 [1, 2] : vector<1x1x256xf32> to vector<1xf32>
    %12 = vector.shape_cast %11 : vector<1xf32> to vector<1x1x1xf32>
    %13 = vector.extract %12[0, 0, 0] : f32 from vector<1x1x1xf32>
    %14 = arith.subf %13, %9 : f32
    %cst_5 = arith.constant 0.000000e+00 : f32
    %15 = arith.cmpf ogt, %14, %cst_5 : f32
    %16 = vector.broadcast %9 : f32 to vector<1x256xf32>
    %17 = arith.subf %5, %16 : vector<1x256xf32>
    %18 = vector.broadcast %14 : f32 to vector<1x256xf32>
    %19 = arith.divf %17, %18 : vector<1x256xf32>
    %cst_6 = arith.constant 0.000000e+00 : f32
    %20 = vector.broadcast %cst_6 : f32 to vector<1x256xf32>
    %21 = arith.select %15, %19, %20 : vector<1x256xf32>
    %c0_7 = arith.constant 0 : index
    %c0_8 = arith.constant 0 : index
    %22 = vector.load %arg3[%c0_7, %c0_8] : memref<1x256xf32, #tpu.memory_space<vmem>>, vector<1x256xf32>
    %cst_9 = arith.constant 1.000000e+00 : f32
    %23 = vector.broadcast %cst_9 : f32 to vector<1x256xf32>
    %24 = arith.addf %22, %23 : vector<1x256xf32>
    %25 = arith.cmpf ogt, %24, %21 : vector<1x256xf32>
    %26 = arith.extui %25 : vector<1x256xi1> to vector<1x256xi32>
    %27 = arith.sitofp %26 : vector<1x256xi32> to vector<1x256xf32>
    %c0_10 = arith.constant 0 : index
    %c0_11 = arith.constant 0 : index
    %28 = vector.load %arg4[%c0_10, %c0_11] : memref<16x256xf32, #tpu.memory_space<vmem>>, vector<16x256xf32>
    %29 = vector.broadcast %27 : vector<1x256xf32> to vector<16x256xf32>
    %30 = arith.mulf %28, %29 : vector<16x256xf32>
    %c0_12 = arith.constant 0 : index
    %c0_13 = arith.constant 0 : index
    %31 = vector.load %arg5[%c0_12, %c0_13] : memref<16x256xf32, #tpu.memory_space<vmem>>, vector<16x256xf32>
    tpu.vector_store %arg5[%c0_12, %c0_13], %30 {strides = array<i32>} : memref<16x256xf32, #tpu.memory_space<vmem>>, vector<16x256xf32>,
    %c0_14 = arith.constant 0 : index
    %c0_15 = arith.constant 0 : index
    %32 = vector.load %arg6[%c0_14, %c0_15] : memref<1x256xf32, #tpu.memory_space<vmem>>, vector<1x256xf32>
    tpu.vector_store %arg6[%c0_14, %c0_15], %21 {strides = array<i32>} : memref<1x256xf32, #tpu.memory_space<vmem>>, vector<1x256xf32>,
    return
  }
  func.func @transform_0(%arg0: i32) -> (i32, i32) {
    %c0_i32 = arith.constant 0 : i32
    %c0_i32_0 = arith.constant 0 : i32
    %c0_i32_1 = arith.constant 0 : i32
    return %c0_i32, %c0_i32_0 : i32, i32
  }
  func.func @transform_1(%arg0: i32) -> (i32, i32) {
    %c0_i32 = arith.constant 0 : i32
    %c0_i32_0 = arith.constant 0 : i32
    %c0_i32_1 = arith.constant 0 : i32
    return %c0_i32, %c0_i32_0 : i32, i32
  }
  func.func @transform_2(%arg0: i32) -> (i32, i32) {
    %c0_i32 = arith.constant 0 : i32
    %c0_i32_0 = arith.constant 0 : i32
    %c0_i32_1 = arith.constant 0 : i32
    return %c0_i32, %c0_i32_0 : i32, i32
  }
  func.func @transform_3(%arg0: i32) -> (i32, i32) {
    %c0_i32 = arith.constant 0 : i32
    %c0_i32_0 = arith.constant 0 : i32
    return %arg0, %c0_i32 : i32, i32
  }
  func.func @transform_4(%arg0: i32) -> (i32, i32) {
    %c0_i32 = arith.constant 0 : i32
    %c0_i32_0 = arith.constant 0 : i32
    return %arg0, %c0_i32 : i32, i32
  }
  func.func @transform_5(%arg0: i32) -> (i32, i32) {
    %c0_i32 = arith.constant 0 : i32
    %c0_i32_0 = arith.constant 0 : i32
    %c0_i32_1 = arith.constant 0 : i32
    return %c0_i32, %c0_i32_0 : i32, i32
  }
}

</mosaic_0001>

<bundles_post_ra>
// kernel: tpu_custom_call.1
= control target key start
LH: loop header
LB: loop body
LE: loop exit
PB: predicated region body
PF: predicated region fallthrough
CT: control target
= control target key end

     0   :  { %11 = vsyncpa [#allocation3], 0  ;;  %s378_s0 = inlined_call_operand.hbm [shape: f32[2,256], index: 0, kind: input, shape index: {}]   ;;  %s379_s1 = inlined_call_operand.hbm [shape: f32[2,256], index: 1, kind: input, shape index: {}]   ;;  %s380_s2 = inlined_call_operand.vmem [shape: f32[1,256], index: 2, kind: input, shape index: {}]   ;;  %s381_s3 = inlined_call_operand.hbm [shape: f32[16,256], index: 3, kind: input, shape index: {}]   ;;  %s382_s4 = inlined_call_operand.hbm [shape: f32[16,256], index: 4, kind: output, shape index: {0}]   ;;  %s383_s5 = inlined_call_operand.hbm [shape: f32[1,256], index: 5, kind: output, shape index: {1}]  }
   0x1   :  { %12 = vsyncpa [#allocation6], 0 }
   0x2   :  { %13 = vsyncpa [#allocation4], 0 }
   0x3   :  { %14 = vsyncpa [#allocation10], 0  ;;  %s304_s18 = smov [#allocation5]   ;;  %s305_s20 = smov [#allocation2]  }
   0x4   :  { %s31_s19 = sshll.u32 %s304_s18, 4  ;;  %s21_s21 = sshll.u32 %s305_s20, 4  ;;  %s32_s19 = int_to_ptr.vmem [resolvable:$true] %s31_s19  ;;  %s22_s21 = int_to_ptr.vmem [resolvable:$true] %s21_s21 }
   0x5   :  { %s204_s22 = scalar_lea.vmem %s32_s19, 64  ;;  %p209_p1 = scmp.lt.s32.totalorder %s32_s19, %s32_s19 }
   0x6   :  { %p205_p0 = scmp.ne.s32.totalorder %s32_s19, %s204_s22  ;;  %p210_p2 = scmp.lt.s32.totalorder %s204_s22, %s204_s22 }
   0x8   :  { %p211_p3 = por %p210_p2, %p209_p1 }
   0xa   :  { %p212_p4 = pnand %p211_p3, %p205_p0 }
   0xc   :  { %215 = shalt.err (!%p212_p4)
}
   0xd   :  { %34 = dma.hbm_to_vmem [thread:$0]  %s379_s1, 64, %s32_s19, [#allocation6]  }
   0xe   :  { %s224_s25 = scalar_lea.vmem %s22_s21, 64  ;;  %p229_p6 = scmp.lt.s32.totalorder %s22_s21, %s22_s21 }
   0xf   :  { %p225_p5 = scmp.ne.s32.totalorder %s22_s21, %s224_s25  ;;  %p230_p7 = scmp.lt.s32.totalorder %s224_s25, %s224_s25 }
  0x11   :  { %p231_p8 = por %p230_p7, %p229_p6 }
  0x13   :  { %p232_p9 = pnand %p231_p8, %p225_p5 }
  0x15   :  { %235 = shalt.err (!%p232_p9)
}
  0x16   :  { %24 = dma.hbm_to_vmem [thread:$0]  %s378_s0, 64, %s22_s21, [#allocation3]  }
  0x17   :  { %s306_s28 = smov [#allocation7]  }
  0x18   :  { %s42_s29 = sshll.u32 %s306_s28, 4  ;;  %s43_s29 = int_to_ptr.vmem [resolvable:$true] %s42_s29 }
  0x19   :  { %s244_s30 = scalar_lea.vmem %s43_s29, 512  ;;  %p249_p11 = scmp.lt.s32.totalorder %s43_s29, %s43_s29 }
  0x1a   :  { %p245_p10 = scmp.ne.s32.totalorder %s43_s29, %s244_s30  ;;  %p250_p12 = scmp.lt.s32.totalorder %s244_s30, %s244_s30 }
  0x1c   :  { %p251_p13 = por %p250_p12, %p249_p11 }
  0x1e   :  { %p252_p0 = pnand %p251_p13, %p245_p10 }
  0x20   :  { %255 = shalt.err (!%p252_p0)
}
  0x21   :  { %s307_s1 = smov 256   ;;  %s308_s6 = smov 16  }
  0x22   :  { %48 = dma.hbm_to_vmem [thread:$0]  %s381_s3, 512, %s43_s29, [#allocation6], %s307_s1, %s307_s1, %s308_s6  }
  0x23   :  { %296 = dma.done.wait [#allocation3], 64  }
  0x24   :  { %297 = vsyncadd [#allocation3], 4294967232 }
  0x25   :  { %298 = dma.done.wait [#allocation6], 576  }
  0x26   :  { %299 = vsyncadd [#allocation6], 4294966720  ;;  %v58_v0 = vld [vmem:[#allocation2] ss:$2 sm:$0x3]  ;;  %v68_v3 = vlaneseq  ;;  %vm78_vm0 = vcmask 1040384  }
  0x27   :  { %192 = vrcp.f32 %v58_v0  ;;  %v60_v1 = vld [vmem:[#allocation2 + $0x1] ss:$2 sm:$0x3]  ;;  %v62_v2 = vld [vmem:[#allocation5 + $0x1] ss:$2 sm:$0x3] }
  0x28   :  { %v63_v4 = vsub.f32 %v60_v1, %v62_v2  ;;  %v354_v5 = vshrl.u32 %v68_v3, 7  ;;  %v114_v35 = vld [vmem:[%s380_s2] sm:$0x3]  ;;  %s309_s13 = smov [#allocation9]   ;;  %vm144_vm1 = vcmp.lt.s32.totalorder %v68_v3, 256  ;;  %v119_v42 = vld [vmem:[#allocation7] sm:$0xff] }
  0x29   :  { %s165_s14 = sshll.u32 %s309_s13, 4  ;;  %v115_v39 = vadd.f32 1.0, %v114_v35  ;;  %s310_s15 = smov [#allocation8]   ;;  %v311_v43 = vmov 0.0   ;;  %v120_v45 = vld [vmem:[#allocation7 + $0x8] sm:$0xff]  ;;  %v121_v46 = vld [vmem:[#allocation7 + $0x10] sm:$0xff]  ;;  %s166_s14 = int_to_ptr.vmem [resolvable:$true] %s165_s14 }
  0x2a   :  { %v64_v6 = vand.u32 2147483647, %v63_v4  ;;  %v70_v7 = vsub.s32 0, %v354_v5  ;;  %v74_v8 = vsub.s32 1, %v354_v5  ;;  %s152_s16 = sshll.u32 %s310_s15, 4  ;;  %v122_v47 = vld [vmem:[#allocation7 + $0x18] sm:$0xff]  ;;  %p261_p3 = scmp.lt.s32.totalorder %s166_s14, %s166_s14  ;;  %s153_s16 = int_to_ptr.vmem [resolvable:$true] %s152_s16 }
  0x2b   :  { %s256_s2 = scalar_lea.vmem %s166_s14, 32 }
  0x2c   :  { %p257_p2 = scmp.ne.s32.totalorder %s166_s14, %s256_s2  ;;  %p262_p4 = scmp.lt.s32.totalorder %s256_s2, %s256_s2 }
  0x2e   :  { %p263_p5 = por %p262_p4, %p261_p3 }
  0x30   :  { %p264_p6 = pnand %p263_p5, %p257_p2 }
  0x34   :  { %v193_v9 = vpop.eup %192 }
  0x35   :  { %v66_v10 = vmul.f32 %v193_v9, %v64_v6 }
  0x37   :  { %v71_v11 = vrot.slane %v66_v10, %v70_v7  ;;  %v75_v12 = vrot.slane %v66_v10, %v74_v8 }
  0x39   :  { %v79_v13 = vsel %vm78_vm0, %v71_v11, inf  ;;  %v80_v14 = vsel %vm78_vm0, %v75_v12, inf  ;;  %v91_v15 = vsel %vm78_vm0, %v71_v11, -inf  ;;  %v92_v16 = vsel %vm78_vm0, %v75_v12, -inf }
  0x3a   :  { %v81_v17 = vmin.f32 %v79_v13, %v80_v14  ;;  %v93_v18 = vmax.f32 %v91_v15, %v92_v16 }
  0x3c   :  { %82 = vmin.xlane.f32.xlu0 %v81_v17 }
  0x40   :  { %94 = vmax.xlane.f32.xlu0 %v93_v18 }
  0xc5   :  { %v83_v19 = vpop.xlane.xlu0 %82 }
  0xc6   :  { %v84_v20 = vrot.slane %v83_v19, 4 }
  0xc8   :  { %v85_v21 = vmin.f32 %v83_v19, %v84_v20 }
  0xc9   :  { %v95_v22 = vpop.xlane.xlu0 %94 }
  0xca   :  { %v86_v23 = vrot.slane %v85_v21, 2  ;;  %v96_v24 = vrot.slane %v95_v22, 4 }
  0xcc   :  { %v97_v25 = vmax.f32 %v95_v22, %v96_v24  ;;  %v87_v26 = vmin.f32 %v85_v21, %v86_v23 }
  0xce   :  { %v98_v27 = vrot.slane %v97_v25, 2  ;;  %v88_v28 = vrot.slane %v87_v26, 1 }
  0xd0   :  { %v99_v29 = vmax.f32 %v97_v25, %v98_v27  ;;  %v89_v30 = vmin.f32 %v87_v26, %v88_v28 }
  0xd2   :  { %180 = vpush %v89_v30  ;;  %v100_v31 = vrot.slane %v99_v29, 1 }
  0xd4   :  { %v101_v32 = vmax.f32 %v99_v29, %v100_v31 }
  0xd6   :  { %182 = vpush %v101_v32 }
 0x103   :  { %s181_s0 = spop %180 }
 0x104   :  { %v105_v34 = vstv %s181_s0 }
 0x105   :  { %v106_v36 = vsub.f32 %v66_v10, %v105_v34 }
 0x107   :  { %s183_s3 = spop %182 }
 0x108   :  { %s103_s9 = ssub.f32 %s183_s3, %s181_s0 }
 0x10a   :  { %v107_v33 = vstv %s103_s9  ;;  %p104_p1 = scmp.gt.f32.partialorder %s103_s9, 0.0 }
 0x10b   :  { %194 = vrcp.f32 %v107_v33 }
 0x10c   :  { %s110_s10 = scalar_select %p104_p1, 1, 0 }
 0x10e   :  { %v111_v37 = vstv %s110_s10 }
 0x10f   :  { %vm112_vm2 = vcmp.eq.s32.totalorder %v111_v37, 1 }
 0x118   :  { %v195_v38 = vpop.eup %194 }
 0x119   :  { %v109_v40 = vmul.f32 %v195_v38, %v106_v36 }
 0x11b   :  { %v113_v41 = vsel %vm112_vm2, %v109_v40, 0.0 }
 0x11c   :  { %vm116_vm3 = vcmp.gt.f32.partialorder %v115_v39, %v113_v41  ;;  %146 = vst.msk [vmem:[#allocation9] sm:$0x3] %vm144_vm1, %v113_v41 }
 0x11d   :  { %v179_v44 = vsel %vm116_vm3, 1.0, %v311_v43 }
 0x11e   :  { %267 = shalt.err (!%p264_p6)
}
 0x11f   :  { %168 = dma.vmem_to_hbm [thread:$0]  %s166_s14, 32, %s383_s5, [#allocation10]   ;;  %v127_v48 = vrot.slane %v179_v44, %v70_v7  ;;  %v131_v49 = vrot.slane %v179_v44, %v74_v8 }
 0x120   :  { %s276_s19 = scalar_lea.vmem %s153_s16, 512  ;;  %p281_p8 = scmp.lt.s32.totalorder %s153_s16, %s153_s16 }
 0x121   :  { %v134_v50 = vmul.f32 %v127_v48, %v119_v42  ;;  %v135_v51 = vmul.f32 %v131_v49, %v120_v45  ;;  %v136_v52 = vmul.f32 %v127_v48, %v121_v46  ;;  %v137_v53 = vmul.f32 %v131_v49, %v122_v47  ;;  %p277_p7 = scmp.ne.s32.totalorder %s153_s16, %s276_s19  ;;  %p282_p9 = scmp.lt.s32.totalorder %s276_s19, %s276_s19 }
 0x123   :  { %138 = vst [vmem:[#allocation8] sm:$0xff] %v134_v50  ;;  %139 = vst [vmem:[#allocation8 + $0x8] sm:$0xff] %v135_v51  ;;  %p283_p10 = por %p282_p9, %p281_p8 }
 0x124   :  { %140 = vst [vmem:[#allocation8 + $0x10] sm:$0xff] %v136_v52  ;;  %141 = vst [vmem:[#allocation8 + $0x18] sm:$0xff] %v137_v53 }
 0x125   :  { %p284_p11 = pnand %p283_p10, %p277_p7 }
 0x127   :  { %287 = shalt.err (!%p284_p11)
}
 0x128   :  { %158 = dma.vmem_to_hbm [thread:$0]  %s153_s16, 512, %s382_s4, [#allocation4], %s307_s1, %s307_s1, %s308_s6  }
 0x129   :  { %300 = dma.done.wait [#allocation4], 512  }
 0x12a   :  { %301 = vsyncadd [#allocation4], 4294966784 }
 0x12b   :  { %302 = dma.done.wait [#allocation10], 32  }
 0x12c   :  { %303 = vsyncadd [#allocation10], 4294967264 }
 0x12d   :  { %175 = vsyncpa [#allocation3], 1 }
 0x12e   :  { %176 = vsyncpa [#allocation6], 1 }
 0x12f   :  { %177 = vsyncpa [#allocation4], 1 }
 0x130   :  { %178 = vsyncpa [#allocation10], 1 }

</bundles_post_ra>
